<compile_context>
chip_gen: v6e
topology: v6e:2x2x1
jax: 0.10.0
libtpu: 0.0.40
codegen_flags: <defaults>
</compile_context>

<pallas_src>
import functools

import jax
import jax.numpy as jnp
from jax.experimental import pallas as pl
from jax.experimental.pallas import tpu as pltpu


# --------------------------------------------------------------------------- #
# Kernel
# --------------------------------------------------------------------------- #
def _accuracy_kernel(logits_ref, target_ref, partial_ref, *, total_rows,
                     tile_rows):
    """One batch tile: partial[i] = sum(argmax(logits,-1) == target), masked."""
    pid = pl.program_id(0)

    logits = logits_ref[...]            # (tb, C) in native dtype (f32/bf16/...)
    targets = target_ref[...]           # (tb, 1) int32
    tb, c = logits.shape

    # argmax along the class (lane) axis, first-occurrence tie-breaking.
    col_ids = jax.lax.broadcasted_iota(jnp.int32, (tb, c), 1)
    row_max = jnp.max(logits, axis=1, keepdims=True)            # (tb, 1)
    is_max = logits == row_max                                  # (tb, C) bool
    preds = jnp.min(jnp.where(is_max, col_ids, c), axis=1,
                    keepdims=True)                              # (tb, 1) int32

    correct = preds == targets                                  # (tb, 1) bool

    # Mask rows that fall past the true batch size on the (padded) last tile.
    row_ids = jax.lax.broadcasted_iota(jnp.int32, (tb, 1), 0) + pid * tile_rows
    valid = row_ids < total_rows

    partial_ref[0, 0] = jnp.sum(
        jnp.logical_and(correct, valid).astype(jnp.int32))


# --------------------------------------------------------------------------- #
# Tile sizing / VMEM budgeting (generation-aware, lane-padded accounting)
# --------------------------------------------------------------------------- #
def _round_up(x: int, m: int) -> int:
    return ((x + m - 1) // m) * m


# Native packed sublane multiple per element size.
_SUBLANE = {4: 8, 2: 16, 1: 32}


@functools.lru_cache(maxsize=1)
def _vmem_limit_bytes() -> int:
    """Scoped-VMEM limit: ~75% of physical, capped at 96 MiB.

    v7x (64 MiB physical) -> 48 MiB; v5e/v6e (128 MiB physical) -> 96 MiB.
    The explicit limit matters on v5e whose default scoped VMEM is only 16 MiB.
    """
    phys = 64 * 1024 * 1024  # conservative default = smallest (v7x)
    try:
        info = pltpu.get_tpu_info()
        cap = getattr(info, "vmem_capacity_bytes", None)
        if cap:
            phys = int(cap)
    except Exception:
        pass
    return min((phys * 3) // 4, 96 * 1024 * 1024)


def _pick_tile_rows(b: int, c: int, itemsize: int, vmem_limit: int) -> int:
    """Largest sublane-aligned batch tile that fits the VMEM budget.

    Accounts for the lane-padded class width (VMEM pads the last dim to 128
    lanes), double buffering of both input blocks, and the live (tb, C)
    elementwise intermediates (iota / is_max / where result).
    """
    c_pad = _round_up(c, 128)
    sub = _SUBLANE.get(itemsize, 8)
    usable = (vmem_limit * 7) // 10            # headroom for compiler scratch
    bytes_per_row = (
        2 * c_pad * itemsize                   # logits block, double-buffered
        + 2 * 128 * 4                          # (tb,1) int32 targets, lane-padded, x2
        + 3 * c_pad * 4                        # live (tb,C) int32/bool intermediates
    )
    rows = usable // max(1, bytes_per_row)
    rows = max(sub, (rows // sub) * sub)
    if b <= rows:
        return b                               # single tile == full batch dim
    return int(rows)


# --------------------------------------------------------------------------- #
# Wrapper
# --------------------------------------------------------------------------- #
@functools.partial(jax.jit, static_argnames=("tile_rows",))
def multiclass_accuracy(logits: jax.Array, targets: jax.Array,
                        *, tile_rows: int | None = None) -> jax.Array:
    """logits: [B, n_classes] (any float dtype); targets: [B] int -> scalar acc."""
    b, c = logits.shape
    itemsize = logits.dtype.itemsize
    targets_2d = targets.astype(jnp.int32).reshape(b, 1)

    vmem_limit = _vmem_limit_bytes()
    tb = tile_rows if tile_rows is not None else _pick_tile_rows(
        b, c, itemsize, vmem_limit)
    num_tiles = pl.cdiv(b, tb)

    kernel = functools.partial(_accuracy_kernel, total_rows=b, tile_rows=tb)

    cost = pl.CostEstimate(
        flops=3 * b * c,
        transcendentals=0,
        bytes_accessed=b * c * itemsize + 4 * b + 4 * num_tiles,
    )

    partials = pl.pallas_call(
        kernel,
        out_shape=jax.ShapeDtypeStruct((num_tiles, 1), jnp.int32),
        grid=(num_tiles,),
        in_specs=[
            pl.BlockSpec((tb, c), lambda i: (i, 0)),   # logits tile (native dtype)
            pl.BlockSpec((tb, 1), lambda i: (i, 0)),   # targets tile
        ],
        # One independent (1,1) partial-count block per grid step -> the axis
        # can be "parallel" (shards across both TensorCores on v7x).
        out_specs=pl.BlockSpec((1, 1), lambda i: (i, 0),
                               memory_space=pltpu.SMEM),
        compiler_params=pltpu.CompilerParams(
            dimension_semantics=("parallel",),
            vmem_limit_bytes=int(vmem_limit),
        ),
        cost_estimate=cost,
    )(logits, targets_2d)

    # Final reduction + true divide in the wrapper (tiny: num_tiles elements).
    return jnp.sum(partials).astype(jnp.float32) / jnp.float32(b)


class Classifier:
    """JAX/Pallas mirror of the abstract PyTorch Classifier."""

    def __init__(self, n_classes: int):
        self.n_classes = n_classes
        # Three split metrics share ONE jitted accuracy kernel (deduplicated).
        self._acc_fn = multiclass_accuracy
        self.accuracies = {
            "train": self._acc_fn,
            "val": self._acc_fn,
            "test": self._acc_fn,
        }

    def forward(self, x):
        raise NotImplementedError("The forward method must be implemented.")

    def freeze(self):
        # No parameters in the base class; nothing to freeze.
        return self


if __name__ == "__main__":
    n_classes = 16
    batch = 8

    key = jax.random.PRNGKey(0)
    k_logits, k_targets, k_logits2, k_targets2 = jax.random.split(key, 4)
    logits = jax.random.normal(k_logits, (batch, n_classes), dtype=jnp.float32)
    targets = jax.random.randint(k_targets, (batch,), 0, n_classes,
                                 dtype=jnp.int32)

    clf = Classifier(n_classes)

    # Run the shared Pallas accuracy kernel for each split's metric.
    results = {split: fn(logits, targets) for split, fn in clf.accuracies.items()}
    for v in results.values():
        jax.block_until_ready(v)

    ref = jnp.mean((jnp.argmax(logits, axis=-1) == targets).astype(jnp.float32))
    assert abs(float(results["train"]) - float(ref)) < 1e-6, (results["train"], ref)

    # Exercise the tiled / ragged-batch / parallel-partials path:
    # B=20, tile_rows=8 -> 3 grid steps, last tile padded (masked rows).
    b2 = 20
    logits2 = jax.random.normal(k_logits2, (b2, n_classes), dtype=jnp.float32)
    targets2 = jax.random.randint(k_targets2, (b2,), 0, n_classes,
                                  dtype=jnp.int32)
    acc2 = multiclass_accuracy(logits2, targets2, tile_rows=8)
    jax.block_until_ready(acc2)
    ref2 = jnp.mean((jnp.argmax(logits2, axis=-1) == targets2).astype(jnp.float32))
    assert abs(float(acc2) - float(ref2)) < 1e-6, (acc2, ref2)

    # Native-bf16 path (no wrapper upcast): compare against a bf16 reference.
    logits_bf16 = logits2.astype(jnp.bfloat16)
    acc_bf16 = multiclass_accuracy(logits_bf16, targets2, tile_rows=8)
    jax.block_until_ready(acc_bf16)
    ref_bf16 = jnp.mean((jnp.argmax(logits_bf16, axis=-1) == targets2)
                        .astype(jnp.float32))
    assert abs(float(acc_bf16) - float(ref_bf16)) < 1e-6, (acc_bf16, ref_bf16)

    # Auto-picked (large) tile path on a bigger batch: single / few big tiles.
    b3 = 4096
    k3a, k3b = jax.random.split(k_logits2)
    logits3 = jax.random.normal(k3a, (b3, n_classes), dtype=jnp.float32)
    targets3 = jax.random.randint(k3b, (b3,), 0, n_classes, dtype=jnp.int32)
    acc3 = multiclass_accuracy(logits3, targets3)
    jax.block_until_ready(acc3)
    ref3 = jnp.mean((jnp.argmax(logits3, axis=-1) == targets3).astype(jnp.float32))
    assert abs(float(acc3) - float(ref3)) < 1e-6, (acc3, ref3)

    print("KERNEL_OK")
</pallas_src>

<mosaic_0001>
module attributes {stable_mosaic.version = 11 : i64} {
  func.func @_accuracy_kernel(%arg0: i32, %arg1: memref<8x16xf32, #tpu.memory_space<vmem>>, %arg2: memref<8x1xi32, #tpu.memory_space<vmem>>, %arg3: memref<1x1xi32, #tpu.memory_space<smem>>) attributes {dimension_semantics = [#tpu.dimension_semantics<parallel>], iteration_bounds = array<i64: 1>, scalar_prefetch = 0 : i64, scratch_operands = 0 : i64, tpu.core_type = #tpu.core_type<tc>, window_params = [{transform_indices = @transform_0, window_bounds = array<i64: 8, 16>}, {transform_indices = @transform_1, window_bounds = array<i64: 8, 1>}, {transform_indices = @transform_2, window_bounds = array<i64: 1, 1>}]} {
    %c0 = arith.constant 0 : index
    %c0_0 = arith.constant 0 : index
    %0 = vector.load %arg1[%c0, %c0_0] : memref<8x16xf32, #tpu.memory_space<vmem>>, vector<8x16xf32>
    %c0_1 = arith.constant 0 : index
    %c0_2 = arith.constant 0 : index
    %1 = vector.load %arg2[%c0_1, %c0_2] : memref<8x1xi32, #tpu.memory_space<vmem>>, vector<8x1xi32>
    %2 = tpu.iota {dimensions = array<i32: 1>} : vector<8x16xi32>
    %cst = arith.constant dense<0xFF800000> : vector<8xf32>
    %3 = vector.multi_reduction <maximumf>, %0, %cst [1] : vector<8x16xf32> to vector<8xf32>
    %4 = vector.shape_cast %3 : vector<8xf32> to vector<8x1xf32>
    %5 = vector.broadcast %4 : vector<8x1xf32> to vector<8x16xf32>
    %6 = arith.cmpf oeq, %0, %5 : vector<8x16xf32>
    %c16_i32 = arith.constant 16 : i32
    %7 = vector.broadcast %c16_i32 : i32 to vector<8x16xi32>
    %8 = arith.select %6, %2, %7 : vector<8x16xi1>, vector<8x16xi32>
    %cst_3 = arith.constant dense<2147483647> : vector<8xi32>
    %9 = vector.multi_reduction <minsi>, %8, %cst_3 [1] : vector<8x16xi32> to vector<8xi32>
    %10 = vector.shape_cast %9 : vector<8xi32> to vector<8x1xi32>
    %11 = arith.cmpi eq, %10, %1 : vector<8x1xi32>
    %12 = tpu.iota {dimensions = array<i32: 0>} : vector<8x1xi32>
    %c8_i32 = arith.constant 8 : i32
    %13 = arith.muli %arg0, %c8_i32 : i32
    %14 = vector.broadcast %13 : i32 to vector<8x1xi32>
    %15 = arith.addi %12, %14 : vector<8x1xi32>
    %c8_i32_4 = arith.constant 8 : i32
    %16 = vector.broadcast %c8_i32_4 : i32 to vector<8x1xi32>
    %17 = arith.cmpi slt, %15, %16 : vector<8x1xi32>
    %18 = arith.andi %11, %17 : vector<8x1xi1>
    %19 = arith.extui %18 : vector<8x1xi1> to vector<8x1xi32>
    %20 = vector.shape_cast %19 : vector<8x1xi32> to vector<1x8x1xi32>
    %cst_5 = arith.constant dense<0> : vector<1xi32>
    %21 = vector.multi_reduction <add>, %20, %cst_5 [1, 2] : vector<1x8x1xi32> to vector<1xi32>
    %22 = vector.shape_cast %21 : vector<1xi32> to vector<1x1x1xi32>
    %23 = vector.extract %22[0, 0, 0] : i32 from vector<1x1x1xi32>
    %c0_6 = arith.constant 0 : index
    %c0_7 = arith.constant 0 : index
    %24 = memref.load %arg3[%c0_6, %c0_7] : memref<1x1xi32, #tpu.memory_space<smem>>
    memref.store %23, %arg3[%c0_6, %c0_7] : memref<1x1xi32, #tpu.memory_space<smem>>
    return
  }
  func.func @transform_0(%arg0: i32) -> (i32, i32) {
    %c0_i32 = arith.constant 0 : i32
    %c0_i32_0 = arith.constant 0 : i32
    return %arg0, %c0_i32 : i32, i32
  }
  func.func @transform_1(%arg0: i32) -> (i32, i32) {
    %c0_i32 = arith.constant 0 : i32
    %c0_i32_0 = arith.constant 0 : i32
    return %arg0, %c0_i32 : i32, i32
  }
  func.func @transform_2(%arg0: i32) -> (i32, i32) {
    %c0_i32 = arith.constant 0 : i32
    %c0_i32_0 = arith.constant 0 : i32
    return %arg0, %c0_i32 : i32, i32
  }
}

</mosaic_0001>

<bundles_post_ra>
// kernel: multiclass_accuracy.1
= control target key start
LH: loop header
LB: loop body
LE: loop exit
PB: predicated region body
PF: predicated region fallthrough
CT: control target
= control target key end

     0   :  { %vm16_vm0 = vcmask 130048   ;;  %s122_s0 = inlined_call_operand.vmem [shape: f32[8,16], index: 0, kind: input, shape index: {}]   ;;  %s123_s1 = inlined_call_operand.vmem [shape: s32[8,1], index: 1, kind: input, shape index: {}]   ;;  %s124_s2 = inlined_call_operand.hbm [shape: s32[1,1], index: 2, kind: output, shape index: {}]  }
   0x1   :  { %v12_v0 = vld [vmem:[%s122_s0] sm:$0xff] }
   0x2   :  { %7 = vsyncpa [#allocation3], 0  ;;  %v17_v1 = vsel %vm16_vm0, %v12_v0, -inf  ;;  %v14_v2 = vlaneseq  ;;  %v13_v17 = vld [vmem:[%s123_s1] sm:$0xff]  ;;  %vm46_vm3 = vcmask 7168   ;;  %v96_v19 = vmov 0  }
   0x3   :  { %18 = vmax.xlane.f32.xlu0 %v17_v1  ;;  %s97_s12 = smov [#allocation2]  }
   0x4   :  { %v15_v3 = vand.u32 127, %v14_v2 }
  0x8c   :  { %v19_v4 = vpop.xlane.xlu0 %18 }
  0x8d   :  { %vm20_vm1 = vcmp.eq.f32.partialorder %v12_v0, %v19_v4 }
  0x8e   :  { %v21_v5 = vsel %vm20_vm1, %v15_v3, 16 }
  0x8f   :  { %v22_v6 = vsel %vm16_vm0, %v21_v5, 2147483647 }
  0x90   :  { %v24_v7 = vshra.s32 %v22_v6, 16  ;;  %v23_v9 = vand.u32 65535, %v22_v6 }
  0x92   :  { %v26_v8 = vcvt.s32.f32 %v24_v7  ;;  %v25_v11 = vcvt.s32.f32 %v23_v9 }
  0x94   :  { %27 = vmin.xlane.f32.xlu0 %v26_v8 }
 0x11d   :  { %v28_v10 = vpop.xlane.xlu0 %27 }
 0x11e   :  { %vm29_vm2 = vcmp.eq.f32.partialorder %v26_v8, %v28_v10  ;;  %v34_v13 = vcvt.f32.s32 %v28_v10 }
 0x11f   :  { %v30_v12 = vsel %vm29_vm2, %v25_v11, inf }
 0x120   :  { %31 = vmin.xlane.f32.xlu1 %v30_v12  ;;  %v35_v15 = vshll.u32 %v34_v13, 16 }
 0x1a9   :  { %v32_v14 = vpop.xlane.xlu1 %31 }
 0x1aa   :  { %v33_v16 = vcvt.f32.s32 %v32_v14 }
 0x1ac   :  { %v36_v18 = vadd.s32 %v35_v15, %v33_v16 }
 0x1ae   :  { %vm37_vm4 = vcmp.eq.s32.totalorder %v36_v18, %v13_v17 }
 0x1af   :  { %v45_v20 = vsel %vm37_vm4, 1, %v96_v19 }
 0x1b0   :  { %v47_v21 = vsel %vm46_vm3, %v45_v20, 0 }
 0x1b1   :  { %v49_v22 = vshrl.u32 %v47_v21, 16  ;;  %v48_v23 = vand.u32 65535, %v47_v21 }
 0x1b3   :  { %v51_v24 = vcvt.s32.f32 %v49_v22  ;;  %v50_v25 = vcvt.s32.f32 %v48_v23 }
 0x1b5   :  { %54 = vadd.xlane.f32.xlu1 %v51_v24  ;;  %52 = vadd.xlane.f32.xlu0 %v50_v25 }
 0x23e   :  { %v55_v26 = vpop.xlane.xlu1 %54  ;;  %v53_v27 = vpop.xlane.xlu0 %52 }
 0x23f   :  { %v57_v28 = vcvt.f32.s32 %v55_v26  ;;  %v56_v30 = vcvt.f32.s32 %v53_v27 }
 0x241   :  { %v58_v29 = vshll.u32 %v57_v28, 16 }
 0x243   :  { %v59_v31 = vadd.s32 %v58_v29, %v56_v30 }
 0x245   :  { %v60_v32 = vrot.slane %v59_v31, 4 }
 0x247   :  { %v61_v33 = vadd.s32 %v60_v32, %v59_v31 }
 0x249   :  { %v62_v34 = vrot.slane %v61_v33, 2 }
 0x24b   :  { %v63_v35 = vadd.s32 %v62_v34, %v61_v33 }
 0x24d   :  { %v64_v36 = vrot.slane %v63_v35, 1 }
 0x24f   :  { %v65_v37 = vadd.s32 %v64_v36, %v63_v35 }
 0x251   :  { %82 = vpush %v65_v37 }
 0x282   :  { %s83_s1 = spop %82 }
 0x283   :  { %68 = sst [smem:[#allocation2]] %s83_s1 }
 0x284   :  { %76 = dma.smem_to_hbm %s97_s12, 16, %s124_s2, [#allocation3]  }
 0x285   :  { %94 = dma.done.wait [#allocation3], 16  }
 0x286   :  { %95 = vsyncadd [#allocation3], 4294967280 }
 0x287   :  { %80 = sfence }
 0x288   :  { %81 = vsyncpa [#allocation3], 1 }

</bundles_post_ra>
